<compile_context>
chip_gen: v5e
topology: v5e:2x2
jax: 0.10.0
libtpu: 0.0.40
codegen_flags: <defaults>
</compile_context>

<pallas_src>
import functools
import math

import numpy as np
import jax
import jax.numpy as jnp
from jax.experimental import pallas as pl
from jax.experimental.pallas import tpu as pltpu


def _round_up(a, b):
    return (a + b - 1) // b * b


# Tile limits for the generic tiled path.  512x512 output tiles give an
# arithmetic intensity of ~256 FLOP/byte (compute-bound on v5e, close on v7x)
# while keeping the double-buffered VMEM footprint < ~8 MiB even with f32 I/O,
# which fits every generation's default scoped-VMEM budget (16 MiB on v5e,
# 32 MiB on v6e/v7x).
_TM_MAX = 512
_TN_MAX = 512
_TK_MAX = 512
# Weight-resident single-pass path whenever the whole padded [K, N] weight is
# <= 2 MiB (512x512 f32, 1024x1024 bf16, ...).  2 MiB * 2 buffers + streamed
# x / out tiles stays well inside the 16 MiB v5e scoped default.
_RESIDENT_WEIGHT_BYTES = 2 * 1024 * 1024


# ---------------------------------------------------------------------------
# kernels
# ---------------------------------------------------------------------------
def _equal_linear_resident_kernel(x_ref, w_ref, b_ref, o_ref, *,
                                  out_scale, bias_scale, fuse_lrelu, neg_slope):
    """Weight-resident single pass: o = epilogue(x_tile @ W_full)."""
    acc = jnp.dot(x_ref[...], w_ref[...], preferred_element_type=jnp.float32)
    # sqrt(2) activation gain is pre-folded into out_scale / bias_scale.
    y = acc * out_scale + b_ref[...] * bias_scale
    if fuse_lrelu:
        y = jnp.where(y >= 0.0, y, neg_slope * y)
    o_ref[...] = y.astype(o_ref.dtype)


def _equal_linear_tiled_kernel(x_ref, w_ref, b_ref, o_ref, acc_ref, *,
                               out_scale, bias_scale, fuse_lrelu, neg_slope):
    """Generic (i, j, k) tiled matmul with f32 accumulator resident over k."""
    k = pl.program_id(2)

    @pl.when(k == 0)
    def _():
        acc_ref[...] = jnp.zeros_like(acc_ref)

    acc_ref[...] += jnp.dot(x_ref[...], w_ref[...],
                            preferred_element_type=jnp.float32)

    @pl.when(k == pl.num_programs(2) - 1)
    def _():
        y = acc_ref[...] * out_scale + b_ref[...] * bias_scale
        if fuse_lrelu:
            y = jnp.where(y >= 0.0, y, neg_slope * y)
        o_ref[...] = y.astype(o_ref.dtype)


# ---------------------------------------------------------------------------
# one-time parameter prep (amortized across forward calls)
# ---------------------------------------------------------------------------
def _pick_config(out_dim, in_dim, itemsize):
    kp128 = _round_up(in_dim, 128)
    np128 = _round_up(out_dim, 128)
    if kp128 * np128 * itemsize <= _RESIDENT_WEIGHT_BYTES:
        return dict(resident=True, Kp=kp128, Np=np128, tn=np128, tk=kp128)
    tn = min(_TN_MAX, np128)
    tk = min(_TK_MAX, kp128)
    return dict(resident=False,
                Kp=_round_up(in_dim, tk), Np=_round_up(out_dim, tn),
                tn=tn, tk=tk)


def prepare_equal_linear_params(weight, bias, dtype):
    """Cast, transpose to [K, N] and pad the weight; keep the bias f32.

    Doing this once (instead of per forward call) removes 1-2 full HBM passes
    over the weight from every call.
    """
    out_dim, in_dim = weight.shape
    dtype = jnp.dtype(dtype)
    cfg = _pick_config(out_dim, in_dim, dtype.itemsize)
    kp, npad = cfg["Kp"], cfg["Np"]

    w = jnp.asarray(weight).astype(dtype).T              # [K, N]
    if (kp, npad) != (in_dim, out_dim):
        w = jnp.pad(w, ((0, kp - in_dim), (0, npad - out_dim)))

    b = bias if bias is not None else jnp.zeros((out_dim,), jnp.float32)
    b = jnp.asarray(b).astype(jnp.float32)                # f32 bias: negligible DMA
    if npad != out_dim:
        b = jnp.pad(b, (0, npad - out_dim))
    b = b.reshape(1, npad)

    return dict(w=w, b=b, in_dim=in_dim, out_dim=out_dim, cfg=cfg)


# ---------------------------------------------------------------------------
# forward wrapper
# ---------------------------------------------------------------------------
def equal_linear_pallas(x, params, scale, lr_mul, activation=None, *,
                        tm_max=_TM_MAX):
    cfg = params["cfg"]
    in_dim, out_dim = params["in_dim"], params["out_dim"]
    kp, npad, tn, tk = cfg["Kp"], cfg["Np"], cfg["tn"], cfg["tk"]
    w, b = params["w"], params["b"]

    assert x.shape[-1] == in_dim, (x.shape, in_dim)
    out_dtype = x.dtype
    x2 = x.reshape(-1, in_dim)
    if x2.dtype != w.dtype:
        x2 = x2.astype(w.dtype)                 # keep MXU operand dtypes matched
    m = x2.shape[0]

    itemsize = jnp.dtype(w.dtype).itemsize
    row_align = max(8, 32 // itemsize)          # 8 for f32, 16 for bf16, 32 for int8/fp8
    tm = min(tm_max, _round_up(m, row_align))
    mp = _round_up(m, tm)

    if (mp, kp) != (m, in_dim):
        x2 = jnp.pad(x2, ((0, mp - m), (0, kp - in_dim)))

    fuse_lrelu = bool(activation)
    act_gain = math.sqrt(2.0) if fuse_lrelu else 1.0
    consts = dict(out_scale=float(scale) * act_gain,     # fold sqrt(2) gain into
                  bias_scale=float(lr_mul) * act_gain,   # the existing multiplies
                  fuse_lrelu=fuse_lrelu, neg_slope=0.2)

    if cfg["resident"]:
        out_p = pl.pallas_call(
            functools.partial(_equal_linear_resident_kernel, **consts),
            out_shape=jax.ShapeDtypeStruct((mp, npad), out_dtype),
            grid=(mp // tm,),
            in_specs=[
                pl.BlockSpec((tm, kp), lambda i: (i, 0)),   # x   : streamed once
                pl.BlockSpec((kp, npad), lambda i: (0, 0)),  # W^T : VMEM-resident
                pl.BlockSpec((1, npad), lambda i: (0, 0)),   # bias (f32)
            ],
            out_specs=pl.BlockSpec((tm, npad), lambda i: (i, 0)),
            compiler_params=pltpu.CompilerParams(
                dimension_semantics=("parallel",)),          # M splits over TCs (v7x)
        )(x2, w, b)
    else:
        out_p = pl.pallas_call(
            functools.partial(_equal_linear_tiled_kernel, **consts),
            out_shape=jax.ShapeDtypeStruct((mp, npad), out_dtype),
            grid=(mp // tm, npad // tn, kp // tk),
            in_specs=[
                pl.BlockSpec((tm, tk), lambda i, j, k: (i, k)),   # x
                pl.BlockSpec((tk, tn), lambda i, j, k: (k, j)),   # W^T, [K, N] layout
                pl.BlockSpec((1, tn), lambda i, j, k: (0, j)),    # bias (f32)
            ],
            out_specs=pl.BlockSpec((tm, tn), lambda i, j, k: (i, j)),
            scratch_shapes=[pltpu.VMEM((tm, tn), jnp.float32)],
            compiler_params=pltpu.CompilerParams(
                dimension_semantics=("parallel", "parallel", "arbitrary")),
        )(x2, w, b)

    out = out_p[:m, :out_dim]
    return out.reshape(*x.shape[:-1], out_dim)


# ---------------------------------------------------------------------------
# module (mirrors the PyTorch EqualLinear __init__ / forward)
# ---------------------------------------------------------------------------
class EqualLinear:
    def __init__(self, in_dim, out_dim, bias=True, bias_init=0, lr_mul=1,
                 activation=None, *, key):
        # weight ~ N(0, 1) / lr_mul, bias filled with bias_init (as in PyTorch)
        self.weight = jax.random.normal(key, (out_dim, in_dim), jnp.float32) / lr_mul
        self.bias = (jnp.full((out_dim,), float(bias_init), jnp.float32)
                     if bias else None)
        self.activation = activation
        self.scale = 1.0 / math.sqrt(in_dim) * lr_mul
        self.lr_mul = lr_mul
        self._prep_cache = {}

    def _prepared(self, dtype):
        dt = jnp.dtype(dtype)
        if dt not in self._prep_cache:
            self._prep_cache[dt] = prepare_equal_linear_params(
                self.weight, self.bias, dt)
        return self._prep_cache[dt]

    def __call__(self, x):
        return equal_linear_pallas(x, self._prepared(x.dtype),
                                   self.scale, self.lr_mul, self.activation)


# ---------------------------------------------------------------------------
# plain-JAX reference (exact EqualLinear / fused_leaky_relu semantics)
# ---------------------------------------------------------------------------
def equal_linear_reference(x, weight, bias, scale, lr_mul, activation=None):
    y = jnp.einsum('...k,nk->...n', x.astype(jnp.float32),
                   weight.astype(jnp.float32) * scale)
    if bias is not None:
        y = y + bias.astype(jnp.float32) * lr_mul
    if activation:
        # fused_leaky_relu: leaky_relu(x + b, 0.2) * sqrt(2)
        y = jnp.where(y >= 0.0, y, 0.2 * y) * math.sqrt(2.0)
    return y


if __name__ == "__main__":
    key = jax.random.PRNGKey(0)
    k1, k2, k3, k4, kx1, kx2, kx3 = jax.random.split(key, 7)

    # 1) small f32, plain linear path (weight-resident kernel)
    batch, seq, in_dim, out_dim = 2, 8, 32, 48
    x = jax.random.normal(kx1, (batch, seq, in_dim), dtype=jnp.float32)
    lin = EqualLinear(in_dim, out_dim, bias=True, bias_init=0.1, lr_mul=0.5,
                      activation=None, key=k1)
    y = jax.block_until_ready(lin(x))
    assert y.shape == (batch, seq, out_dim), y.shape
    y_ref = equal_linear_reference(x, lin.weight, lin.bias, lin.scale,
                                   lin.lr_mul, lin.activation)
    np.testing.assert_allclose(np.asarray(y), np.asarray(y_ref),
                               rtol=1e-5, atol=1e-5)

    # 2) small f32, fused leaky-relu path (weight-resident kernel)
    lin_act = EqualLinear(in_dim, out_dim, bias=True, bias_init=0.0, lr_mul=0.01,
                          activation="fused_lrelu", key=k2)
    y2 = jax.block_until_ready(lin_act(x))
    y2_ref = equal_linear_reference(x, lin_act.weight, lin_act.bias, lin_act.scale,
                                    lin_act.lr_mul, lin_act.activation)
    np.testing.assert_allclose(np.asarray(y2), np.asarray(y2_ref),
                               rtol=1e-5, atol=1e-5)

    # 3) bf16, StyleGAN2 mapping-network shape (512x512, weight-resident,
    #    multi-step M grid) against the f32 reference.
    lin_map = EqualLinear(512, 512, bias=True, bias_init=0.0, lr_mul=0.01,
                          activation="fused_lrelu", key=k3)
    x3 = jax.random.normal(kx2, (2, 512, 512), dtype=jnp.float32).astype(jnp.bfloat16)
    y3 = jax.block_until_ready(lin_map(x3))
    assert y3.dtype == jnp.bfloat16 and y3.shape == (2, 512, 512)
    y3_ref = equal_linear_reference(x3, lin_map.weight, lin_map.bias, lin_map.scale,
                                    lin_map.lr_mul, lin_map.activation)
    np.testing.assert_allclose(np.asarray(y3.astype(jnp.float32)),
                               np.asarray(y3_ref), rtol=3e-2, atol=3e-2)

    # 4) f32, larger-than-resident weight (768x768 f32 > 2 MiB): exercises the
    #    tiled kernel with K accumulation, N tiling and padding on every axis.
    lin_big = EqualLinear(768, 768, bias=True, bias_init=0.05, lr_mul=1.0,
                          activation="fused_lrelu", key=k4)
    x4 = jax.random.normal(kx3, (5, 8, 768), dtype=jnp.float32)
    y4 = jax.block_until_ready(lin_big(x4))
    assert y4.shape == (5, 8, 768)
    y4_ref = equal_linear_reference(x4, lin_big.weight, lin_big.bias, lin_big.scale,
                                    lin_big.lr_mul, lin_big.activation)
    np.testing.assert_allclose(np.asarray(y4), np.asarray(y4_ref),
                               rtol=1e-4, atol=1e-4)

    print("KERNEL_OK")
</pallas_src>

<mosaic_0001>
module attributes {stable_mosaic.version = 11 : i64} {
  func.func @_equal_linear_resident_kernel(%arg0: i32, %arg1: memref<16x128xf32, #tpu.memory_space<vmem>>, %arg2: memref<128x128xf32, #tpu.memory_space<vmem>>, %arg3: memref<1x128xf32, #tpu.memory_space<vmem>>, %arg4: memref<16x128xf32, #tpu.memory_space<vmem>>) attributes {dimension_semantics = [#tpu.dimension_semantics<parallel>], iteration_bounds = array<i64: 1>, scalar_prefetch = 0 : i64, scratch_operands = 0 : i64, tpu.core_type = #tpu.core_type<tc>, window_params = [{transform_indices = @transform_0, window_bounds = array<i64: 16, 128>}, {pipeline_mode = #tpu.pipeline_mode<synchronous>, transform_indices = @transform_1, window_bounds = array<i64: 128, 128>}, {pipeline_mode = #tpu.pipeline_mode<synchronous>, transform_indices = @transform_2, window_bounds = array<i64: 1, 128>}, {transform_indices = @transform_3, window_bounds = array<i64: 16, 128>}]} {
    %c0 = arith.constant 0 : index
    %c0_0 = arith.constant 0 : index
    %0 = vector.load %arg1[%c0, %c0_0] : memref<16x128xf32, #tpu.memory_space<vmem>>, vector<16x128xf32>
    %c0_1 = arith.constant 0 : index
    %c0_2 = arith.constant 0 : index
    %1 = vector.load %arg2[%c0_1, %c0_2] : memref<128x128xf32, #tpu.memory_space<vmem>>, vector<128x128xf32>
    %cst = arith.constant dense<0.000000e+00> : vector<16x128xf32>
    %2 = tpu.matmul %0, %1, %cst {dimension_numbers = #tpu.dot_dimension_numbers<[1], [0], [0], [1], [0, 0, 1, 1], [], []>} : vector<16x128xf32>, vector<128x128xf32>, vector<16x128xf32> -> vector<16x128xf32>
    %cst_3 = arith.constant 0.0883883461 : f32
    %3 = vector.broadcast %cst_3 : f32 to vector<16x128xf32>
    %4 = arith.mulf %2, %3 : vector<16x128xf32>
    %c0_4 = arith.constant 0 : index
    %c0_5 = arith.constant 0 : index
    %5 = vector.load %arg3[%c0_4, %c0_5] : memref<1x128xf32, #tpu.memory_space<vmem>>, vector<1x128xf32>
    %cst_6 = arith.constant 5.000000e-01 : f32
    %6 = vector.broadcast %cst_6 : f32 to vector<1x128xf32>
    %7 = arith.mulf %5, %6 : vector<1x128xf32>
    %8 = vector.broadcast %7 : vector<1x128xf32> to vector<16x128xf32>
    %9 = arith.addf %4, %8 : vector<16x128xf32>
    %c0_7 = arith.constant 0 : index
    %c0_8 = arith.constant 0 : index
    %10 = vector.load %arg4[%c0_7, %c0_8] : memref<16x128xf32, #tpu.memory_space<vmem>>, vector<16x128xf32>
    tpu.vector_store %arg4[%c0_7, %c0_8], %9 {strides = array<i32>} : memref<16x128xf32, #tpu.memory_space<vmem>>, vector<16x128xf32>,
    return
  }
  func.func @transform_0(%arg0: i32) -> (i32, i32) {
    %c0_i32 = arith.constant 0 : i32
    %c0_i32_0 = arith.constant 0 : i32
    return %arg0, %c0_i32 : i32, i32
  }
  func.func @transform_1(%arg0: i32) -> (i32, i32) {
    %c0_i32 = arith.constant 0 : i32
    %c0_i32_0 = arith.constant 0 : i32
    %c0_i32_1 = arith.constant 0 : i32
    return %c0_i32, %c0_i32_0 : i32, i32
  }
  func.func @transform_2(%arg0: i32) -> (i32, i32) {
    %c0_i32 = arith.constant 0 : i32
    %c0_i32_0 = arith.constant 0 : i32
    %c0_i32_1 = arith.constant 0 : i32
    return %c0_i32, %c0_i32_0 : i32, i32
  }
  func.func @transform_3(%arg0: i32) -> (i32, i32) {
    %c0_i32 = arith.constant 0 : i32
    %c0_i32_0 = arith.constant 0 : i32
    return %arg0, %c0_i32 : i32, i32
  }
}

</mosaic_0001>

<bundles_post_ra>
// kernel: tpu_custom_call.1
= control target key start
LH: loop header
LB: loop body
LE: loop exit
PB: predicated region body
PF: predicated region fallthrough
CT: control target
= control target key end

     0   :  { %8 = vsyncpa [#allocation3], 0  ;;  %s264_s0 = inlined_call_operand.hbm [shape: f32[16,128], index: 0, kind: input, shape index: {}]   ;;  %s265_s1 = inlined_call_operand.hbm [shape: f32[128,128], index: 1, kind: input, shape index: {}]   ;;  %s266_s2 = inlined_call_operand.vmem [shape: f32[1,128], index: 2, kind: input, shape index: {}]   ;;  %s267_s3 = inlined_call_operand.hbm [shape: f32[16,128], index: 3, kind: output, shape index: {}]  }
   0x1   :  { %9 = vsyncpa [#allocation6], 0 }
   0x2   :  { %10 = vsyncpa [#allocation4], 0  ;;  %s15_s14 = sshll.u32 %s264_s0, 4  ;;  %s218_s15 = smov [#allocation2]   ;;  %s16_s14 = int_to_ptr.hbm [resolvable:$true] %s15_s14 }
   0x3   :  { %s17_s16 = sshll.u32 %s218_s15, 4  ;;  %s28_s19 = sshll.u32 %s265_s1, 4  ;;  %s18_s16 = int_to_ptr.vmem [resolvable:$true] %s17_s16  ;;  %s29_s19 = int_to_ptr.hbm [resolvable:$true] %s28_s19 }
   0x4   :  { %s219_s20 = smov 128   ;;  %s220_s21 = smov 8  }
   0x5   :  { %23 = dma.hbm_to_vmem [thread:$0]  %s16_s14, 256, %s18_s16, [#allocation3], %s219_s20, %s219_s20, %s220_s21  }
   0x6   :  { %s221_s22 = smov [#allocation5]  }
   0x7   :  { %s30_s23 = sshll.u32 %s221_s22, 4  ;;  %s31_s23 = int_to_ptr.vmem [resolvable:$true] %s30_s23 }
   0x8   :  { %36 = dma.hbm_to_vmem [thread:$0]  %s29_s19, 2048, %s31_s23, [#allocation6], %s219_s20, %s219_s20, %s220_s21  }
   0x9   :  { %212 = dma.done.wait [#allocation3], 256  }
   0xa   :  { %213 = vsyncadd [#allocation3], 4294967040 }
   0xb   :  { %214 = dma.done.wait [#allocation6], 2048  }
   0xc   :  { %215 = vsyncadd [#allocation6], 4294965248  ;;  %v64_v0 = vld [vmem:[#allocation5 + $0x78] sm:$0xff]  ;;  %v63_v1 = vld [vmem:[#allocation5 + $0x70] sm:$0xff]  ;;  %s222_s24 = smov [#allocation7]   ;;  %s105_s28 = sshll.u32 %s267_s3, 4  ;;  %s106_s28 = int_to_ptr.hbm [resolvable:$true] %s105_s28 }
   0xd   :  { %65 = vmatpush.msra.mxu0 %v64_v0  ;;  %119 = vmatpush.msra.mxu1 %v64_v0  ;;  %v62_v2 = vld [vmem:[#allocation5 + $0x68] sm:$0xff]  ;;  %v61_v3 = vld [vmem:[#allocation5 + $0x60] sm:$0xff]  ;;  %v60_v4 = vld [vmem:[#allocation5 + $0x58] sm:$0xff]  ;;  %s103_s25 = sshll.u32 %s222_s24, 4  ;;  %s104_s25 = int_to_ptr.vmem [resolvable:$true] %s103_s25 }
   0xe   :  { %v59_v5 = vld [vmem:[#allocation5 + $0x50] sm:$0xff]  ;;  %v58_v6 = vld [vmem:[#allocation5 + $0x48] sm:$0xff]  ;;  %v57_v7 = vld [vmem:[#allocation5 + $0x40] sm:$0xff] }
   0xf   :  { %66 = vmatpush.msra.mxu0 %v63_v1  ;;  %120 = vmatpush.msra.mxu1 %v63_v1  ;;  %v56_v8 = vld [vmem:[#allocation5 + $0x38] sm:$0xff]  ;;  %v55_v9 = vld [vmem:[#allocation5 + $0x30] sm:$0xff]  ;;  %v54_v10 = vld [vmem:[#allocation5 + $0x28] sm:$0xff] }
  0x10   :  { %v53_v11 = vld [vmem:[#allocation5 + $0x20] sm:$0xff]  ;;  %v52_v12 = vld [vmem:[#allocation5 + $0x18] sm:$0xff]  ;;  %v51_v13 = vld [vmem:[#allocation5 + $0x10] sm:$0xff] }
  0x11   :  { %67 = vmatpush.msra.mxu0 %v62_v2  ;;  %121 = vmatpush.msra.mxu1 %v62_v2  ;;  %v50_v14 = vld [vmem:[#allocation5 + $0x8] sm:$0xff]  ;;  %v49_v15 = vld [vmem:[#allocation5] sm:$0xff]  ;;  %v47_v16 = vld [vmem:[#allocation2] sm:$0xff] }
  0x12   :  { %v48_v17 = vld [vmem:[#allocation2 + $0x8] sm:$0xff]  ;;  %v90_v18 = vld [vmem:[%s266_s2] sm:$0x1] }
  0x13   :  { %68 = vmatpush.msra.mxu0 %v61_v3  ;;  %122 = vmatpush.msra.mxu1 %v61_v3  ;;  %v91_v19 = vmul.f32 0.5, %v90_v18 }
  0x15   :  { %69 = vmatpush.msra.mxu0 %v60_v4  ;;  %123 = vmatpush.msra.mxu1 %v60_v4  ;;  %v93_v20 = vperm.slane %v91_v19, 0 }
  0x17   :  { %70 = vmatpush.msra.mxu0 %v59_v5  ;;  %124 = vmatpush.msra.mxu1 %v59_v5 }
  0x19   :  { %71 = vmatpush.msra.mxu0 %v58_v6  ;;  %125 = vmatpush.msra.mxu1 %v58_v6 }
  0x1b   :  { %72 = vmatpush.msra.mxu0 %v57_v7  ;;  %126 = vmatpush.msra.mxu1 %v57_v7 }
  0x1d   :  { %73 = vmatpush.msra.mxu0 %v56_v8  ;;  %127 = vmatpush.msra.mxu1 %v56_v8 }
  0x1f   :  { %74 = vmatpush.msra.mxu0 %v55_v9  ;;  %128 = vmatpush.msra.mxu1 %v55_v9 }
  0x21   :  { %75 = vmatpush.msra.mxu0 %v54_v10  ;;  %129 = vmatpush.msra.mxu1 %v54_v10 }
  0x23   :  { %76 = vmatpush.msra.mxu0 %v53_v11  ;;  %130 = vmatpush.msra.mxu1 %v53_v11 }
  0x25   :  { %77 = vmatpush.msra.mxu0 %v52_v12  ;;  %131 = vmatpush.msra.mxu1 %v52_v12 }
  0x27   :  { %78 = vmatpush.msra.mxu0 %v51_v13  ;;  %132 = vmatpush.msra.mxu1 %v51_v13 }
  0x29   :  { %79 = vmatpush.msra.mxu0 %v50_v14  ;;  %133 = vmatpush.msra.mxu1 %v50_v14 }
  0x2b   :  { %80 = vmatpush.msra.mxu0 %v49_v15  ;;  %134 = vmatpush.msra.mxu1 %v49_v15 }
  0x2c   :  { %81 = vmatmul.f32.vlgmr.msra.gmra.mxu0 %v47_v16  ;;  %84 = vmatmul.f32.vlgmr.msra.gmra.mxu1 %v48_v17 }
  0xa9   :  { %v82_v21 = vpop.f32.mrf.mxu0  ;;  %v85_v22 = vpop.f32.mrf.mxu1 }
  0xaa   :  { %v88_v23 = vmul.f32 0.088388346, %v82_v21  ;;  %v89_v24 = vmul.f32 0.088388346, %v85_v22 }
  0xac   :  { %v95_v25 = vadd.f32 %v93_v20, %v88_v23  ;;  %v96_v26 = vadd.f32 %v93_v20, %v89_v24 }
  0xae   :  { %97 = vst [vmem:[#allocation7] sm:$0xff] %v95_v25 }
  0xaf   :  { %98 = vst [vmem:[#allocation7 + $0x8] sm:$0xff] %v96_v26 }
  0xb0   :  { %111 = dma.vmem_to_hbm [thread:$0]  %s104_s25, 256, %s106_s28, [#allocation4], %s219_s20, %s219_s20, %s220_s21  }
  0xb1   :  { %216 = dma.done.wait [#allocation4], 256  }
  0xb2   :  { %217 = vsyncadd [#allocation4], 4294967040 }
  0xb3   :  { %116 = vsyncpa [#allocation3], 1 }
  0xb4   :  { %117 = vsyncpa [#allocation6], 1 }
  0xb5   :  { %118 = vsyncpa [#allocation4], 1 }

</bundles_post_ra>
